<compile_context>
chip_gen: v7x
topology: tpu7x:2x2x1
jax: 0.10.0
libtpu: 0.0.40
codegen_flags: <defaults>
</compile_context>

<pallas_src>
import jax
import jax.numpy as jnp
from jax.experimental import pallas as pl
from jax.experimental.pallas import tpu as pltpu

_LANE = 128
_SUBLANE = 8


def _round_up(a, b):
    return (a + b - 1) // b * b


def _max_rows_per_tile():
    """Largest row-tile per chip generation (for f32 x streaming)."""
    try:
        kind = jax.devices()[0].device_kind.lower()
    except Exception:
        kind = ""
    if "7" in kind:      # v7x: 3.2 TB/s HBM per TC, 64 MiB VMEM per TC
        return 4096
    if "v6" in kind:     # v6e: ~1.4 TB/s, 32 MiB scoped-VMEM default
        return 4096
    return 2048          # v5e / unknown: stay well under the 16 MiB scoped default


def _pick_tm(n):
    if n <= 1024:
        # Single tile; a block dim equal to the full array dim is always legal.
        return int(n)
    # Keep >= 4 grid steps (megacore / dual-TC sharding) but tiles big enough
    # to amortize the ~0.35 us per-grid-step overhead.
    target = _round_up(pl.cdiv(n, 4), 256)
    return int(min(_max_rows_per_tile(), max(256, target)))


def _classifier_kernel(x_ref, wt_ref, b_ref, o_ref):
    # (TM, 512) @ (512, 2) with f32 accumulation on the MXU, + bias broadcast.
    acc = jnp.dot(x_ref[...], wt_ref[...], preferred_element_type=jnp.float32)
    o_ref[...] = (acc + b_ref[...]).astype(o_ref.dtype)


def classifier_forward(x, weight, bias, norm_flag=True, *, tm=None):
    """x: (N, 512), weight: (2, 512), bias: (2,) -> (N, 2) float32."""
    n, d_in = x.shape
    d_out, d_in_w = weight.shape
    assert d_in == d_in_w, (d_in, d_in_w)

    w32 = weight.astype(jnp.float32)
    if norm_flag:
        # l2_norm(weight, axis=0): no epsilon, matching torch.norm + torch.div
        # (an all-zero weight column would produce NaN there too).
        col_norm = jnp.sqrt(jnp.sum(w32 * w32, axis=0, keepdims=True))  # (1, 512)
        w_used = w32 / col_norm
    else:
        w_used = w32

    wt = w_used.T                                     # (512, 2) f32, VMEM resident
    b2 = bias.reshape(1, d_out).astype(jnp.float32)   # (1, 2),    VMEM resident

    if tm is None:
        tm = _pick_tm(n)
    tm = int(min(tm, max(n, 1)))                      # never larger than the batch
    grid = (pl.cdiv(n, tm),)

    # VMEM budget with correct lane/sublane padding of every buffer.
    x_item = jnp.dtype(x.dtype).itemsize
    tm_pad = _round_up(tm, _SUBLANE)
    vmem_limit = (
        2 * tm_pad * _round_up(d_in, _LANE) * x_item               # double-buffered x tiles
        + 2 * tm_pad * _round_up(d_out, _LANE) * 4                 # lane-padded (TM, 2) out buffers
        + 2 * _round_up(d_in, _SUBLANE) * _round_up(d_out, _LANE) * 4  # resident Wt
        + 2 * _SUBLANE * _LANE * 4                                 # resident bias
        + (2 << 20)                                                # headroom
    )

    cost = pl.CostEstimate(
        flops=2 * n * d_in * d_out,
        transcendentals=0,
        bytes_accessed=n * d_in * x_item + n * d_out * 4 + d_in * d_out * 4 + d_out * 4,
    )

    return pl.pallas_call(
        _classifier_kernel,
        out_shape=jax.ShapeDtypeStruct((n, d_out), jnp.float32),
        grid_spec=pltpu.PrefetchScalarGridSpec(
            num_scalar_prefetch=0,
            grid=grid,
            in_specs=[
                pl.BlockSpec((tm, d_in), lambda i: (i, 0)),      # streamed x
                pl.BlockSpec((d_in, d_out), lambda i: (0, 0)),   # resident Wt
                pl.BlockSpec((1, d_out), lambda i: (0, 0)),      # resident bias
            ],
            out_specs=pl.BlockSpec((tm, d_out), lambda i: (i, 0)),
        ),
        compiler_params=pltpu.CompilerParams(
            dimension_semantics=("parallel",),   # row tiles are independent
            vmem_limit_bytes=int(vmem_limit),
        ),
        cost_estimate=cost,
    )(x, wt, b2)


if __name__ == "__main__":
    key = jax.random.PRNGKey(0)
    k_x, k_w, k_x2 = jax.random.split(key, 3)

    N, D_IN, D_OUT = 8, 512, 2

    # Mirrors the PyTorch __init__: weight ~ N(0, 0.01), bias = 0.
    weight = 0.01 * jax.random.normal(k_w, (D_OUT, D_IN), dtype=jnp.float32)
    bias = jnp.zeros((D_OUT,), dtype=jnp.float32)
    x = jax.random.normal(k_x, (N, D_IN), dtype=jnp.float32)

    def _close(got, ref, tag):
        err = float(jnp.max(jnp.abs(got - ref)))
        scale = float(jnp.max(jnp.abs(ref))) + 1e-6
        assert err <= 3e-2 * scale + 1e-3, (tag, err, scale)

    # norm_flag=True path.
    out = jax.block_until_ready(classifier_forward(x, weight, bias, norm_flag=True))
    assert out.shape == (N, D_OUT)
    w_n = weight / jnp.sqrt(jnp.sum(weight * weight, axis=0, keepdims=True))
    _close(out, x @ w_n.T + bias, "norm_flag=True")

    # norm_flag=False path.
    out_nf = jax.block_until_ready(classifier_forward(x, weight, bias, norm_flag=False))
    assert out_nf.shape == (N, D_OUT)
    _close(out_nf, x @ weight.T + bias, "norm_flag=False")

    # Ragged multi-tile path (grid does not divide N; partial last block) with
    # a nonzero bias to exercise the bias add.
    N2 = 300
    x2 = jax.random.normal(k_x2, (N2, D_IN), dtype=jnp.float32)
    bias2 = jnp.array([0.5, -1.25], dtype=jnp.float32)
    out2 = jax.block_until_ready(
        classifier_forward(x2, weight, bias2, norm_flag=True, tm=128))
    assert out2.shape == (N2, D_OUT)
    _close(out2, x2 @ w_n.T + bias2, "ragged")

    print("KERNEL_OK")
</pallas_src>

<mosaic_0001>
module attributes {stable_mosaic.version = 11 : i64} {
  func.func @_classifier_kernel(%arg0: i32, %arg1: memref<8x512xf32, #tpu.memory_space<vmem>>, %arg2: memref<512x2xf32, #tpu.memory_space<vmem>>, %arg3: memref<1x2xf32, #tpu.memory_space<vmem>>, %arg4: memref<8x2xf32, #tpu.memory_space<vmem>>) attributes {dimension_semantics = [#tpu.dimension_semantics<parallel>], iteration_bounds = array<i64: 1>, scalar_prefetch = 0 : i64, scratch_operands = 0 : i64, tpu.core_type = #tpu.core_type<tc>, window_params = [{transform_indices = @transform_0, window_bounds = array<i64: 8, 512>}, {pipeline_mode = #tpu.pipeline_mode<synchronous>, transform_indices = @transform_1, window_bounds = array<i64: 512, 2>}, {pipeline_mode = #tpu.pipeline_mode<synchronous>, transform_indices = @transform_2, window_bounds = array<i64: 1, 2>}, {transform_indices = @transform_3, window_bounds = array<i64: 8, 2>}]} {
    %c0 = arith.constant 0 : index
    %c0_0 = arith.constant 0 : index
    %0 = vector.load %arg1[%c0, %c0_0] : memref<8x512xf32, #tpu.memory_space<vmem>>, vector<8x512xf32>
    %c0_1 = arith.constant 0 : index
    %c0_2 = arith.constant 0 : index
    %1 = vector.load %arg2[%c0_1, %c0_2] : memref<512x2xf32, #tpu.memory_space<vmem>>, vector<512x2xf32>
    %cst = arith.constant dense<0.000000e+00> : vector<8x2xf32>
    %2 = tpu.matmul %0, %1, %cst {dimension_numbers = #tpu.dot_dimension_numbers<[1], [0], [0], [1], [0, 0, 1, 1], [], []>} : vector<8x512xf32>, vector<512x2xf32>, vector<8x2xf32> -> vector<8x2xf32>
    %c0_3 = arith.constant 0 : index
    %c0_4 = arith.constant 0 : index
    %3 = vector.load %arg3[%c0_3, %c0_4] : memref<1x2xf32, #tpu.memory_space<vmem>>, vector<1x2xf32>
    %4 = vector.broadcast %3 : vector<1x2xf32> to vector<8x2xf32>
    %5 = arith.addf %2, %4 : vector<8x2xf32>
    %c0_5 = arith.constant 0 : index
    %c0_6 = arith.constant 0 : index
    %6 = vector.load %arg4[%c0_5, %c0_6] : memref<8x2xf32, #tpu.memory_space<vmem>>, vector<8x2xf32>
    tpu.vector_store %arg4[%c0_5, %c0_6], %5 {strides = array<i32>} : memref<8x2xf32, #tpu.memory_space<vmem>>, vector<8x2xf32>,
    return
  }
  func.func @transform_0(%arg0: i32) -> (i32, i32) {
    %c0_i32 = arith.constant 0 : i32
    %c0_i32_0 = arith.constant 0 : i32
    return %arg0, %c0_i32 : i32, i32
  }
  func.func @transform_1(%arg0: i32) -> (i32, i32) {
    %c0_i32 = arith.constant 0 : i32
    %c0_i32_0 = arith.constant 0 : i32
    %c0_i32_1 = arith.constant 0 : i32
    return %c0_i32, %c0_i32_0 : i32, i32
  }
  func.func @transform_2(%arg0: i32) -> (i32, i32) {
    %c0_i32 = arith.constant 0 : i32
    %c0_i32_0 = arith.constant 0 : i32
    %c0_i32_1 = arith.constant 0 : i32
    return %c0_i32, %c0_i32_0 : i32, i32
  }
  func.func @transform_3(%arg0: i32) -> (i32, i32) {
    %c0_i32 = arith.constant 0 : i32
    %c0_i32_0 = arith.constant 0 : i32
    return %arg0, %c0_i32 : i32, i32
  }
}

</mosaic_0001>

<bundles_post_ra>
// kernel: tpu_custom_call.1
= control target key start
LH: loop header
LB: loop body
LE: loop exit
PB: predicated region body
PF: predicated region fallthrough
CT: control target
= control target key end

     0   :  { %vm229_vm0 = vcmask 15360   ;;  %s600_s1 = inlined_call_operand.vmem [shape: f32[512,2], index: 1, kind: input, shape index: {}]   ;;  %s601_s0 = inlined_call_operand.vmem [shape: f32[8,512], index: 0, kind: input, shape index: {}]   ;;  %s602_s2 = inlined_call_operand.vmem [shape: f32[1,2], index: 2, kind: input, shape index: {}]   ;;  %s603_s3 = inlined_call_operand.vmem [shape: f32[8,2], index: 3, kind: output, shape index: {}]  }
   0x1   :  { %v34_v0 = vld [vmem:[%s600_s1 + $0x80] sm:$0xff]  ;;  %v35_v1 = vld [vmem:[%s600_s1 + $0x88] sm:$0xff]  ;;  %v36_v11 = vld [vmem:[%s600_s1 + $0x90] sm:$0xff] }
   0x2   :  { %v18_v2 = vld [vmem:[%s600_s1] sm:$0xff]  ;;  %v306_v3 = vpack.c.bf16 %v35_v1, %v34_v0  ;;  %v19_v4 = vld [vmem:[%s600_s1 + $0x8] sm:$0xff]  ;;  %v37_v13 = vld [vmem:[%s600_s1 + $0x98] sm:$0xff] }
   0x3   :  { %v66_v5 = vld [vmem:[%s600_s1 + $0x180] sm:$0xff]  ;;  %v67_v6 = vld [vmem:[%s600_s1 + $0x188] sm:$0xff]  ;;  %v308_v7 = vpack.c.bf16 %v19_v4, %v18_v2  ;;  %v20_v14 = vld [vmem:[%s600_s1 + $0x10] sm:$0xff]  ;;  %v310_v16 = vpack.c.bf16 %v37_v13, %v36_v11 }
   0x4   :  { %v338_v8 = vpack.c.bf16 %v67_v6, %v66_v5  ;;  %v50_v9 = vld [vmem:[%s600_s1 + $0x100] sm:$0xff]  ;;  %v51_v10 = vld [vmem:[%s600_s1 + $0x108] sm:$0xff]  ;;  %307 = vmatprep.subr.bf16.mxu0 %v306_v3  ;;  %v21_v15 = vld [vmem:[%s600_s1 + $0x18] sm:$0xff] }
   0x5   :  { %v340_v12 = vpack.c.bf16 %v51_v10, %v50_v9  ;;  %309 = vmatpush3.bf16.msra.mxu0 %v308_v7  ;;  %v312_v17 = vpack.c.bf16 %v21_v15, %v20_v14  ;;  %v68_v18 = vld [vmem:[%s600_s1 + $0x190] sm:$0xff]  ;;  %v69_v19 = vld [vmem:[%s600_s1 + $0x198] sm:$0xff]  ;;  %v38_v23 = vld [vmem:[%s600_s1 + $0xa0] sm:$0xff] }
   0x6   :  { %339 = vmatprep.subr.bf16.mxu1 %v338_v8  ;;  %v52_v20 = vld [vmem:[%s600_s1 + $0x110] sm:$0xff]  ;;  %v342_v21 = vpack.c.bf16 %v69_v19, %v68_v18  ;;  %v53_v22 = vld [vmem:[%s600_s1 + $0x118] sm:$0xff]  ;;  %v39_v24 = vld [vmem:[%s600_s1 + $0xa8] sm:$0xff]  ;;  %311 = vmatprep.subr.bf16.mxu0 %v310_v16 }
   0x7   :  { %341 = vmatpush3.bf16.msra.mxu1 %v340_v12  ;;  %v344_v25 = vpack.c.bf16 %v53_v22, %v52_v20  ;;  %v314_v26 = vpack.c.bf16 %v39_v24, %v38_v23  ;;  %v22_v27 = vld [vmem:[%s600_s1 + $0x20] sm:$0xff]  ;;  %v23_v28 = vld [vmem:[%s600_s1 + $0x28] sm:$0xff]  ;;  %v40_v35 = vld [vmem:[%s600_s1 + $0xb0] sm:$0xff] }
   0x8   :  { %v70_v29 = vld [vmem:[%s600_s1 + $0x1a0] sm:$0xff]  ;;  %343 = vmatprep.subr.bf16.mxu1 %v342_v21  ;;  %v71_v30 = vld [vmem:[%s600_s1 + $0x1a8] sm:$0xff]  ;;  %v316_v33 = vpack.c.bf16 %v23_v28, %v22_v27  ;;  %v41_v36 = vld [vmem:[%s600_s1 + $0xb8] sm:$0xff] }
   0x9   :  { %v54_v31 = vld [vmem:[%s600_s1 + $0x120] sm:$0xff]  ;;  %v55_v32 = vld [vmem:[%s600_s1 + $0x128] sm:$0xff]  ;;  %313 = vmatpush3.bf16.msra.mxu0 %v312_v17  ;;  %v346_v34 = vpack.c.bf16 %v71_v30, %v70_v29  ;;  %v24_v37 = vld [vmem:[%s600_s1 + $0x30] sm:$0xff]  ;;  %v318_v39 = vpack.c.bf16 %v41_v36, %v40_v35 }
   0xa   :  { %315 = vmatprep.subr.bf16.mxu0 %v314_v26  ;;  %v348_v38 = vpack.c.bf16 %v55_v32, %v54_v31  ;;  %v25_v40 = vld [vmem:[%s600_s1 + $0x38] sm:$0xff]  ;;  %v72_v41 = vld [vmem:[%s600_s1 + $0x1b0] sm:$0xff]  ;;  %v42_v46 = vld [vmem:[%s600_s1 + $0xc0] sm:$0xff] }
   0xb   :  { %345 = vmatpush3.bf16.msra.mxu1 %v344_v25  ;;  %v73_v42 = vld [vmem:[%s600_s1 + $0x1b8] sm:$0xff]  ;;  %v56_v44 = vld [vmem:[%s600_s1 + $0x130] sm:$0xff]  ;;  %v43_v47 = vld [vmem:[%s600_s1 + $0xc8] sm:$0xff]  ;;  %v320_v48 = vpack.c.bf16 %v25_v40, %v24_v37 }
   0xc   :  { %347 = vmatprep.subr.bf16.mxu1 %v346_v34  ;;  %v350_v43 = vpack.c.bf16 %v73_v42, %v72_v41  ;;  %v57_v45 = vld [vmem:[%s600_s1 + $0x138] sm:$0xff]  ;;  %v74_v49 = vld [vmem:[%s600_s1 + $0x1c0] sm:$0xff]  ;;  %v75_v50 = vld [vmem:[%s600_s1 + $0x1c8] sm:$0xff]  ;;  %v322_v52 = vpack.c.bf16 %v43_v47, %v42_v46 }
   0xd   :  { %317 = vmatpush3.bf16.msra.mxu0 %v316_v33  ;;  %v352_v51 = vpack.c.bf16 %v57_v45, %v56_v44  ;;  %v26_v53 = vld [vmem:[%s600_s1 + $0x40] sm:$0xff]  ;;  %v27_v54 = vld [vmem:[%s600_s1 + $0x48] sm:$0xff]  ;;  %v354_v56 = vpack.c.bf16 %v75_v50, %v74_v49  ;;  %v44_v58 = vld [vmem:[%s600_s1 + $0xd0] sm:$0xff] }
   0xe   :  { %319 = vmatprep.subr.bf16.mxu0 %v318_v39  ;;  %v58_v55 = vld [vmem:[%s600_s1 + $0x140] sm:$0xff]  ;;  %v59_v57 = vld [vmem:[%s600_s1 + $0x148] sm:$0xff]  ;;  %v45_v59 = vld [vmem:[%s600_s1 + $0xd8] sm:$0xff]  ;;  %v324_v62 = vpack.c.bf16 %v27_v54, %v26_v53 }
   0xf   :  { %349 = vmatpush3.bf16.msra.mxu1 %v348_v38  ;;  %v76_v60 = vld [vmem:[%s600_s1 + $0x1d0] sm:$0xff]  ;;  %v77_v61 = vld [vmem:[%s600_s1 + $0x1d8] sm:$0xff]  ;;  %v356_v63 = vpack.c.bf16 %v59_v57, %v58_v55  ;;  %v326_v0 = vpack.c.bf16 %v45_v59, %v44_v58  ;;  %v46_v6 = vld [vmem:[%s600_s1 + $0xe0] sm:$0xff] }
  0x10   :  { %351 = vmatprep.subr.bf16.mxu1 %v350_v43  ;;  %v28_v1 = vld [vmem:[%s600_s1 + $0x50] sm:$0xff]  ;;  %v29_v2 = vld [vmem:[%s600_s1 + $0x58] sm:$0xff]  ;;  %v358_v4 = vpack.c.bf16 %v77_v61, %v76_v60  ;;  %v47_v7 = vld [vmem:[%s600_s1 + $0xe8] sm:$0xff] }
  0x11   :  { %321 = vmatpush3.bf16.msra.mxu0 %v320_v48  ;;  %v60_v3 = vld [vmem:[%s600_s1 + $0x150] sm:$0xff]  ;;  %v61_v5 = vld [vmem:[%s600_s1 + $0x158] sm:$0xff]  ;;  %v78_v8 = vld [vmem:[%s600_s1 + $0x1e0] sm:$0xff]  ;;  %v328_v10 = vpack.c.bf16 %v29_v2, %v28_v1  ;;  %v330_v14 = vpack.c.bf16 %v47_v7, %v46_v6 }
  0x12   :  { %323 = vmatprep.subr.bf16.mxu0 %v322_v52  ;;  %v79_v9 = vld [vmem:[%s600_s1 + $0x1e8] sm:$0xff]  ;;  %v30_v11 = vld [vmem:[%s600_s1 + $0x60] sm:$0xff]  ;;  %v360_v13 = vpack.c.bf16 %v61_v5, %v60_v3  ;;  %v48_v19 = vld [vmem:[%s600_s1 + $0xf0] sm:$0xff] }
  0x13   :  { %353 = vmatpush3.bf16.msra.mxu1 %v352_v51  ;;  %v31_v12 = vld [vmem:[%s600_s1 + $0x68] sm:$0xff]  ;;  %v62_v15 = vld [vmem:[%s600_s1 + $0x160] sm:$0xff]  ;;  %v362_v18 = vpack.c.bf16 %v79_v9, %v78_v8  ;;  %v49_v20 = vld [vmem:[%s600_s1 + $0xf8] sm:$0xff] }
  0x14   :  { %355 = vmatprep.subr.bf16.mxu1 %v354_v56  ;;  %v63_v16 = vld [vmem:[%s600_s1 + $0x168] sm:$0xff]  ;;  %v17_v21 = vld [vmem:[%s601_s0 + $0x18] sm:$0xff]  ;;  %v80_v22 = vld [vmem:[%s600_s1 + $0x1f0] sm:$0xff]  ;;  %v332_v24 = vpack.c.bf16 %v31_v12, %v30_v11  ;;  %v334_v26 = vpack.c.bf16 %v49_v20, %v48_v19 }
  0x15   :  { %325 = vmatpush3.bf16.msra.mxu0 %v324_v62  ;;  %v15_v17 = vld [vmem:[%s601_s0 + $0x8] sm:$0xff]  ;;  %v81_v23 = vld [vmem:[%s600_s1 + $0x1f8] sm:$0xff]  ;;  %223 = vmatprep.mubr.f32.mxu1 %v17_v21  ;;  %v364_v25 = vpack.c.bf16 %v63_v16, %v62_v15  ;;  %v32_v27 = vld [vmem:[%s600_s1 + $0x70] sm:$0xff] }
  0x16   :  { %327 = vmatprep.subr.bf16.mxu0 %v326_v0  ;;  %153 = vmatprep.mubr.f32.mxu0 %v15_v17  ;;  %v33_v28 = vld [vmem:[%s600_s1 + $0x78] sm:$0xff]  ;;  %v366_v29 = vpack.c.bf16 %v81_v23, %v80_v22  ;;  %v64_v30 = vld [vmem:[%s600_s1 + $0x170] sm:$0xff]  ;;  %v14_v34 = vld [vmem:[%s601_s0] sm:$0xff] }
  0x17   :  { %357 = vmatpush3.bf16.msra.mxu1 %v356_v63  ;;  %v65_v31 = vld [vmem:[%s600_s1 + $0x178] sm:$0xff]  ;;  %v336_v32 = vpack.c.bf16 %v33_v28, %v32_v27  ;;  %v16_v35 = vld [vmem:[%s601_s0 + $0x10] sm:$0xff]  ;;  %v235_v37 = vld [vmem:[%s602_s2] ss:$0 sm:$0xff] }
  0x18   :  { %359 = vmatprep.subr.bf16.mxu1 %v358_v4  ;;  %v368_v33 = vpack.c.bf16 %v65_v31, %v64_v30 }
  0x19   :  { %329 = vmatpush3.bf16.msra.mxu0 %v328_v10 }
  0x1a   :  { %331 = vmatprep.subr.bf16.mxu0 %v330_v14 }
  0x1b   :  { %361 = vmatpush3.bf16.msra.mxu1 %v360_v13 }
  0x1c   :  { %363 = vmatprep.subr.bf16.mxu1 %v362_v18 }
  0x1d   :  { %333 = vmatpush3.bf16.msra.mxu0 %v332_v24 }
  0x1e   :  { %335 = vmatprep.subr.bf16.mxu0 %v334_v26 }
  0x1f   :  { %365 = vmatpush3.bf16.msra.mxu1 %v364_v25 }
  0x20   :  { %367 = vmatprep.subr.bf16.mxu1 %v366_v29 }
  0x21   :  { %337 = vmatpush3.bf16.msra.mxu0 %v336_v32 }
  0x23   :  { %369 = vmatpush3.bf16.msra.mxu1 %v368_v33 }
  0x24   :  { %154 = vmatmul.mubr.f32.vlgmr.msra.gmra.mrb[0].mxu0 %v14_v34 }
  0x26   :  { %224 = vmatmul.mubr.f32.vlgmr.msra.gmra.mrb[0].mxu1 %v16_v35 }
  0xf7   :  { %v268_v36 = vpop.f32.mrb[0].mxu0 }
  0xf8   :  { %v269_v38 = vpop.f32.mrb[1].mxu0 }
  0xf9   :  { %v303_v39 = vpop.f32.mrb[0].mxu1  ;;  %v270_v40 = vadd.f32 %v269_v38, %v268_v36 }
  0xfa   :  { %v304_v41 = vpop.f32.mrb[1].mxu1 }
  0xfb   :  { %v305_v42 = vadd.f32 %v304_v41, %v303_v39  ;;  %v156_v43 = vadd.f32 %v270_v40, %v235_v37 }
  0xfd   :  { %v226_v44 = vadd.f32 %v305_v42, %v156_v43 }
  0xff   :  { %230 = vst.msk [vmem:[%s603_s3] sm:$0xff] %vm229_vm0, %v226_v44 }

</bundles_post_ra>
